<compile_context>
chip_gen: v6e
topology: v6e:2x2x1
jax: 0.10.0
libtpu: 0.0.40
codegen_flags: <defaults>
</compile_context>

<pallas_src>
import jax
import jax.numpy as jnp
from jax import lax
from jax.experimental import pallas as pl
from jax.experimental.pallas import tpu as pltpu


def _pick_chunk_size(S, max_chunk=256):
    """Largest chunk <= max_chunk that divides S and is a multiple of 8 (else S)."""
    if S <= max_chunk or S % 8 != 0:
        return S
    cs = max_chunk - (max_chunk % 8)
    while S % cs != 0:
        cs -= 8
    return cs


def _make_vmem_kernel(S, CS):
    """Small-vocab path: (V, D) table resident in VMEM, in-VMEM row gather."""

    def kernel(ids_ref, table_ref, pos_ref, out_ref, emb_ref):
        # ids_ref:   (B*S,) int32 in SMEM (scalar prefetch)
        # table_ref: (V, D)  VMEM; constant block index -> DMA'd from HBM once
        # pos_ref:   (CS, D) VMEM chunk of the positional encoding
        # out_ref:   (CS, D) VMEM output chunk (embeddings + pos)
        # emb_ref:   (CS, D) VMEM output chunk (raw embeddings)
        b = pl.program_id(0)
        sc = pl.program_id(1)
        base = b * S + sc * CS

        def gather_row(si, carry):
            tok = ids_ref[base + si]
            emb_ref[pl.ds(si, 1), :] = table_ref[pl.ds(tok, 1), :]
            return carry

        lax.fori_loop(0, CS, gather_row, 0)

        # Fused positional-encoding add (VPU), lane-dense full-block store.
        out_ref[...] = emb_ref[...] + pos_ref[...]

    return kernel


def _make_hbm_kernel(S, CS, group):
    """Large-vocab fallback: table stays in HBM; row DMAs in ping-pong groups."""
    n_groups = CS // group

    def kernel(ids_ref, table_hbm, pos_ref, out_ref, emb_ref, sems):
        # ids_ref:   (B*S,) int32 in SMEM (scalar prefetch)
        # table_hbm: (V, D) ref left in HBM (memory_space=pl.ANY)
        # pos_ref:   (CS, D) VMEM chunk of the positional encoding
        # out_ref:   (CS, D) VMEM output chunk (embeddings + pos)
        # emb_ref:   (CS, D) VMEM output chunk (raw embeddings, gather target)
        # sems:      (2, group) DMA semaphores (ping-pong slots)
        b = pl.program_id(0)
        sc = pl.program_id(1)
        base = b * S + sc * CS

        def row_copy(si, slot, r):
            tok = ids_ref[base + si]
            return pltpu.make_async_copy(
                table_hbm.at[pl.ds(tok, 1)],   # (1, D) HBM source row
                emb_ref.at[pl.ds(si, 1)],      # (1, D) VMEM destination row
                sems.at[slot, r],
            )

        def issue_group(g):                    # g is a static Python int
            slot = g % 2

            def body(r, carry):
                row_copy(g * group + r, slot, r).start()
                return carry

            lax.fori_loop(0, group, body, 0)

        def wait_group(g):
            slot = g % 2

            def body(r, carry):
                # Reconstructed with the REAL source row (ids re-read from
                # SMEM), so src/dst/sem all match the issued copy.
                row_copy(g * group + r, slot, r).wait()
                return carry

            lax.fori_loop(0, group, body, 0)

        issue_group(0)
        for g in range(n_groups):              # static, small (CS/group <= 32)
            if g + 1 < n_groups:
                issue_group(g + 1)             # overlap next group's gathers
            wait_group(g)
            off = g * group                    # static offset within the chunk
            out_ref[pl.ds(off, group), :] = (
                emb_ref[pl.ds(off, group), :] + pos_ref[pl.ds(off, group), :])

    return kernel


def embedding_preprocessor(inputs, embed_table, pos_enc, *,
                           vmem_table_limit_bytes=4 * 1024 * 1024):
    """inputs: (B, S) int token ids; embed_table: (V, D); pos_enc: (S, D).

    Returns (embeddings_with_pos_encoding, embedding_inputs), both (B, S, D).
    """
    B, S = inputs.shape
    V, D = embed_table.shape
    assert pos_enc.shape == (S, D)
    assert embed_table.dtype == pos_enc.dtype

    # NOTE: the (V, D) table is intentionally NOT padded per call.  For fully
    # lane-dense output stores, choose D as a multiple of 128 at init time.
    CS = _pick_chunk_size(S)
    n_s_chunks = S // CS
    ids = inputs.reshape(-1).astype(jnp.int32)   # 1D -> compact SMEM footprint

    out_dtype = embed_table.dtype
    out_shape = (jax.ShapeDtypeStruct((B, S, D), out_dtype),   # embeddings + pos
                 jax.ShapeDtypeStruct((B, S, D), out_dtype))   # raw embeddings

    out_specs = [
        pl.BlockSpec((None, CS, D), lambda b, s, ids_ref: (b, s, 0)),
        pl.BlockSpec((None, CS, D), lambda b, s, ids_ref: (b, s, 0)),
    ]
    pos_spec = pl.BlockSpec((CS, D), lambda b, s, ids_ref: (s, 0))

    table_bytes = V * D * jnp.dtype(embed_table.dtype).itemsize
    if table_bytes <= vmem_table_limit_bytes:
        # Fast path: table fully VMEM-resident (fetched once, constant index).
        kernel = _make_vmem_kernel(S, CS)
        grid_spec = pltpu.PrefetchScalarGridSpec(
            num_scalar_prefetch=1,               # token ids -> SMEM
            grid=(B, n_s_chunks),
            in_specs=[pl.BlockSpec((V, D), lambda b, s, ids_ref: (0, 0)),
                      pos_spec],
            out_specs=out_specs,
        )
    else:
        # Fallback: table stays in HBM; per-row DMA gather in ping-pong groups.
        group = 8 if CS % 8 == 0 else CS
        kernel = _make_hbm_kernel(S, CS, group)
        grid_spec = pltpu.PrefetchScalarGridSpec(
            num_scalar_prefetch=1,
            grid=(B, n_s_chunks),
            in_specs=[pl.BlockSpec(memory_space=pl.ANY),   # table stays in HBM
                      pos_spec],
            out_specs=out_specs,
            scratch_shapes=[pltpu.SemaphoreType.DMA((2, group))],
        )

    with_pos, emb = pl.pallas_call(
        kernel,
        out_shape=out_shape,
        grid_spec=grid_spec,
        compiler_params=pltpu.CompilerParams(
            # Batch and sequence chunks are independent -> both parallel
            # (lets v7x's two TensorCores split work even at B == 1).
            dimension_semantics=("parallel", "parallel"),
            vmem_limit_bytes=32 * 1024 * 1024,
        ),
    )(ids, embed_table, pos_enc)
    return with_pos, emb


if __name__ == "__main__":
    # Module hyperparameters (small, consistent with the forward pass; D is a
    # multiple of 128 so output stores are naturally lane-dense).
    vocab_size = 256
    max_seq_len = 8
    embedding_dims = 128
    batch = 2

    key = jax.random.PRNGKey(0)
    k_ids, k_embed, k_pos = jax.random.split(key, 3)

    # nn.Embedding default init: N(0, 1); TrainablePositionEncoding: 0.02 scale.
    embed_table = jax.random.normal(k_embed, (vocab_size, embedding_dims),
                                    dtype=jnp.float32)
    pos_enc = 0.02 * jax.random.normal(k_pos, (max_seq_len, embedding_dims),
                                       dtype=jnp.float32)
    inputs = jax.random.randint(k_ids, (batch, max_seq_len), 0, vocab_size,
                                dtype=jnp.int32)

    # Pure-JAX reference.
    emb_ref = jnp.take(embed_table, inputs, axis=0)            # (B, S, D)
    with_pos_ref = emb_ref + pos_enc[None, :, :]

    # Fast path: VMEM-resident table (this demo's 128 KiB table takes it).
    with_pos, emb = embedding_preprocessor(inputs, embed_table, pos_enc)
    jax.block_until_ready((with_pos, emb))
    assert with_pos.shape == (batch, max_seq_len, embedding_dims)
    assert emb.shape == (batch, max_seq_len, embedding_dims)
    assert jnp.allclose(emb, emb_ref, atol=1e-6), "embedding mismatch (VMEM path)"
    assert jnp.allclose(with_pos, with_pos_ref, atol=1e-6), "pos-add mismatch (VMEM path)"

    # Large-vocab fallback, forced here so both code paths are validated on-TPU.
    with_pos2, emb2 = embedding_preprocessor(inputs, embed_table, pos_enc,
                                             vmem_table_limit_bytes=0)
    jax.block_until_ready((with_pos2, emb2))
    assert jnp.allclose(emb2, emb_ref, atol=1e-6), "embedding mismatch (HBM path)"
    assert jnp.allclose(with_pos2, with_pos_ref, atol=1e-6), "pos-add mismatch (HBM path)"

    print("KERNEL_OK")
</pallas_src>

<mosaic_0001>
module attributes {stable_mosaic.version = 11 : i64} {
  func.func @kernel(%arg0: i32, %arg1: i32, %arg2: memref<16xi32, #tpu.memory_space<smem>>, %arg3: memref<256x128xf32, #tpu.memory_space<vmem>>, %arg4: memref<8x128xf32, #tpu.memory_space<vmem>>, %arg5: memref<1x8x128xf32, #tpu.memory_space<vmem>>, %arg6: memref<1x8x128xf32, #tpu.memory_space<vmem>>) attributes {dimension_semantics = [#tpu.dimension_semantics<parallel>, #tpu.dimension_semantics<parallel>], iteration_bounds = array<i64: 2, 1>, scalar_prefetch = 1 : i64, scratch_operands = 0 : i64, tpu.core_type = #tpu.core_type<tc>, window_params = [{pipeline_mode = #tpu.pipeline_mode<synchronous>, transform_indices = @transform_0, window_bounds = array<i64: 256, 128>}, {transform_indices = @transform_1, window_bounds = array<i64: 8, 128>}, {transform_indices = @transform_2, window_bounds = array<i64: 1, 8, 128>}, {transform_indices = @transform_3, window_bounds = array<i64: 1, 8, 128>}]} {
    %c8_i32 = arith.constant 8 : i32
    %0 = arith.muli %arg0, %c8_i32 : i32
    %c8_i32_0 = arith.constant 8 : i32
    %1 = arith.muli %arg1, %c8_i32_0 : i32
    %2 = arith.addi %0, %1 : i32
    %c0_i32 = arith.constant 0 : i32
    %c8_i32_1 = arith.constant 8 : i32
    %3 = arith.addi %c0_i32, %c8_i32_1 : i32
    %c1_i32 = arith.constant 1 : i32
    scf.for %arg7 = %c0_i32 to %3 step %c1_i32  : i32 {
      %11 = arith.addi %2, %arg7 : i32
      %12 = arith.index_cast %11 : i32 to index
      %13 = memref.load %arg2[%12] : memref<16xi32, #tpu.memory_space<smem>>
      %14 = arith.index_cast %13 : i32 to index
      %c0_10 = arith.constant 0 : index
      %15 = vector.load %arg3[%14, %c0_10] : memref<256x128xf32, #tpu.memory_space<vmem>>, vector<1x128xf32>
      %c0_11 = arith.constant 0 : index
      %16 = arith.index_cast %arg7 : i32 to index
      %c0_12 = arith.constant 0 : index
      %17 = vector.load %arg6[%c0_11, %16, %c0_12] : memref<1x8x128xf32, #tpu.memory_space<vmem>>, vector<1x1x128xf32>
      %18 = vector.shape_cast %17 : vector<1x1x128xf32> to vector<1x128xf32>
      %19 = vector.shape_cast %15 : vector<1x128xf32> to vector<1x1x128xf32>
      tpu.vector_store %arg6[%c0_11, %16, %c0_12], %19 {strides = array<i32>} : memref<1x8x128xf32, #tpu.memory_space<vmem>>, vector<1x1x128xf32>,
    }
    %c8_i32_2 = arith.constant 8 : i32
    %c0 = arith.constant 0 : index
    %c0_3 = arith.constant 0 : index
    %c0_4 = arith.constant 0 : index
    %4 = vector.load %arg6[%c0, %c0_3, %c0_4] : memref<1x8x128xf32, #tpu.memory_space<vmem>>, vector<1x8x128xf32>
    %5 = vector.shape_cast %4 : vector<1x8x128xf32> to vector<8x128xf32>
    %c0_5 = arith.constant 0 : index
    %c0_6 = arith.constant 0 : index
    %6 = vector.load %arg4[%c0_5, %c0_6] : memref<8x128xf32, #tpu.memory_space<vmem>>, vector<8x128xf32>
    %7 = arith.addf %5, %6 : vector<8x128xf32>
    %c0_7 = arith.constant 0 : index
    %c0_8 = arith.constant 0 : index
    %c0_9 = arith.constant 0 : index
    %8 = vector.load %arg5[%c0_7, %c0_8, %c0_9] : memref<1x8x128xf32, #tpu.memory_space<vmem>>, vector<1x8x128xf32>
    %9 = vector.shape_cast %8 : vector<1x8x128xf32> to vector<8x128xf32>
    %10 = vector.shape_cast %7 : vector<8x128xf32> to vector<1x8x128xf32>
    tpu.vector_store %arg5[%c0_7, %c0_8, %c0_9], %10 {strides = array<i32>} : memref<1x8x128xf32, #tpu.memory_space<vmem>>, vector<1x8x128xf32>,
    return
  }
  func.func @transform_0(%arg0: i32, %arg1: i32, %arg2: memref<16xi32, #tpu.memory_space<smem>>) -> (i32, i32) {
    %c0_i32 = arith.constant 0 : i32
    %c0_i32_0 = arith.constant 0 : i32
    %c0_i32_1 = arith.constant 0 : i32
    return %c0_i32, %c0_i32_0 : i32, i32
  }
  func.func @transform_1(%arg0: i32, %arg1: i32, %arg2: memref<16xi32, #tpu.memory_space<smem>>) -> (i32, i32) {
    %c0_i32 = arith.constant 0 : i32
    %c0_i32_0 = arith.constant 0 : i32
    return %arg1, %c0_i32 : i32, i32
  }
  func.func @transform_2(%arg0: i32, %arg1: i32, %arg2: memref<16xi32, #tpu.memory_space<smem>>) -> (i32, i32, i32) {
    %c0_i32 = arith.constant 0 : i32
    %c0_i32_0 = arith.constant 0 : i32
    return %arg0, %arg1, %c0_i32 : i32, i32, i32
  }
  func.func @transform_3(%arg0: i32, %arg1: i32, %arg2: memref<16xi32, #tpu.memory_space<smem>>) -> (i32, i32, i32) {
    %c0_i32 = arith.constant 0 : i32
    %c0_i32_0 = arith.constant 0 : i32
    return %arg0, %arg1, %c0_i32 : i32, i32, i32
  }
}

</mosaic_0001>

<bundles_post_ra>
// kernel: tpu_custom_call.1
= control target key start
LH: loop header
LB: loop body
LE: loop exit
PB: predicated region body
PF: predicated region fallthrough
CT: control target
= control target key end

     0   :  { %s684_s15 = smov [#allocation3]   ;;  %s901_s0 = inlined_call_operand.hbm [shape: s32[16], index: 0, kind: input, shape index: {}]   ;;  %s902_s1 = inlined_call_operand.hbm [shape: f32[256,128], index: 1, kind: input, shape index: {}]   ;;  %s903_s2 = inlined_call_operand.hbm [shape: f32[8,128], index: 2, kind: input, shape index: {}]   ;;  %s904_s3 = inlined_call_operand.hbm [shape: f32[2,8,128], index: 3, kind: output, shape index: {0}]   ;;  %s905_s4 = inlined_call_operand.hbm [shape: f32[2,8,128], index: 4, kind: output, shape index: {1}]  }
   0x1   :  { %11 = dma.hbm_to_smem %s901_s0, 16, %s684_s15, [#allocation2] }
   0x2   :  { %638 = dma.done.wait [#allocation2], 16 }
   0x3   :  { %639 = vsyncadd [#allocation2], 4294967280 }
   0x4   :  { %13 = sfence }
   0x5   :  { %14 = vsyncpa [#allocation5], 0 }
   0x6   :  { %15 = vsyncpa [#allocation8], 0 }
   0x7   :  { %16 = vsyncpa [#allocation6], 0 }
   0x8   :  { %18 = vsyncpa [#allocation6 + $0x1], 0 }
   0x9   :  { %19 = vsyncpa [#allocation11], 0 }
   0xa   :  { %21 = vsyncpa [#allocation11 + $0x1], 0  ;;  %s719_s18 = smov 0   ;;  %s721_s19 = smov 0  }
   0xb   :  { %s723_s20 = smov 0   ;;  %s725_s21 = smov 0  }
   0xc   :  { %s727_s22 = smov 0   ;;  %s729_s0 = smov 0  }
   0xd LB: > { %s389_s23 = sadd.s32 4294967295, %s678_s0   ;;  %s390_s24 = sadd.s32 4294967294, %s678_s0   ;;  %s678_s0 = sphi %s729_s0, %s27_s0   ;;  %s674_s22 = sphi %s727_s22, %s918_s22   ;;  %s670_s21 = sphi %s725_s21, %s917_s21   ;;  %s666_s20 = sphi %s723_s20, %s916_s20   ;;  %s662_s19 = sphi %s721_s19, %s915_s19   ;;  %s658_s18 = sphi %s719_s18, %s914_s18  }
   0xe   : > { %s39_s25 = sadd.s32 1, %s674_s22  ;;  %s95_s26 = sadd.s32 1, %s666_s20 }
   0xf   : > { %p41_p0 = scmp.ge.s32.totalorder %s39_s25, 2  ;;  %p105_p1 = scmp.ne.s32.totalorder %s666_s20, %s662_s19 }
  0x10   : > { %p106_p2 = scmp.eq.s32.totalorder %s389_s23, 1  ;;  %p111_p3 = scmp.ne.s32.totalorder %s662_s19, %s658_s18 }
  0x11   : > { %s920_s25 = smov (%p41_p0, %s39_s25), 0  ;;  %p112_p5 = scmp.eq.s32.totalorder %s390_s24, 1 }
  0x12   : > { %p759_p4 = por %p106_p2, %p105_p1  ;;  %s90_s28 = ssub.s32 %s674_s22, %s920_s25 }
  0x13   : > { %p391_p6 = scmp.ge.s32.totalorder %s678_s0, 1  ;;  %p93_p7 = scmp.eq.s32.totalorder %s90_s28, 0 }
  0x14   : > { %s907_s27 = scalar_select %p759_p4, 1, 0 }
  0x15   : > { %p766_p8 = por %p112_p5, %p111_p3  ;;  %p147_p9 = scmp.lt.s32.totalorder %s678_s0, 3 }
  0x16   : > { %s772_s30 = scalar_select %p93_p7, %s666_s20, %s95_s26  }
  0x17   : > { %s908_s29 = scalar_select %p766_p8, 1, 0 }
  0x18   : > { %p774_p10 = pnand %p391_p6, %p147_p9  ;;  %p778_p11 = scmp.eq.s32.totalorder %s389_s23, 0 }
  0x19   : > { %s685_s7 = smov [#allocation4]   ;;  %s686_s10 = smov [#allocation7]  }
  0x1a   : > { %p418_p12 = pneg %p774_p10  ;;  %s159_s8 = sshll.u32 %s685_s7, 4  ;;  %s160_s8 = int_to_ptr.vmem [resolvable:$true] %s159_s8 }
  0x1b   : > { %s175_s11 = sshll.u32 %s686_s10, 4  ;;  %s517_s12 = scalar_lea.vmem %s160_s8, 4096  ;;  %s176_s11 = int_to_ptr.vmem [resolvable:$true] %s175_s11 }
  0x1c   : > { %p786_p13 = pnand %p778_p11, %p418_p12  ;;  %p518_p1 = scmp.ne.s32.totalorder %s160_s8, %s517_s12 }
  0x1d   : > { %p525_p5 = scmp.lt.s32.totalorder %s160_s8, %s160_s8  ;;  %p526_p6 = scmp.lt.s32.totalorder %s517_s12, %s517_s12 }
  0x1e   : > { %p508_p0 = pneg %p786_p13 }
  0x1f   : > { %p527_p7 = por %p526_p6, %p525_p5 }
  0x20   : > { %p520_p2 = pnand %p518_p1, %p508_p0 }
  0x22   : > { %p521_p3 = pneg %p520_p2 }
  0x24   : > { %p528_p9 = pnand %p527_p7, %p521_p3 }
  0x26   : > { %531 = shalt.err (!%p528_p9)
}
  0x27   : > { %s687_s13 = smov 128   ;;  %s688_s14 = smov 8  }
  0x28   : > { %421 = dma.hbm_to_vmem [thread:$0]  (!%p786_p13), %s902_s1, 4096, %s160_s8, [#allocation5], %s687_s13, %s687_s13, %s688_s14  }
  0x29   : > { %s543_s17 = scalar_lea.vmem %s176_s11, 128  ;;  %p551_p8 = scmp.lt.s32.totalorder %s176_s11, %s176_s11 }
  0x2a   : > { %p544_p12 = scmp.ne.s32.totalorder %s176_s11, %s543_s17  ;;  %p552_p4 = scmp.lt.s32.totalorder %s543_s17, %s543_s17 }
  0x2c   : > { %p546_p1 = pnand %p544_p12, %p508_p0  ;;  %p553_p5 = por %p552_p4, %p551_p8 }
  0x2e   : > { %p547_p2 = pneg %p546_p1 }
  0x30   : > { %p554_p3 = pnand %p553_p5, %p547_p2 }
  0x32   : > { %557 = shalt.err (!%p554_p3)
}
  0x33   : > { %424 = dma.hbm_to_vmem [thread:$0]  (!%p786_p13), %s903_s2, 128, %s176_s11, [#allocation8]  }
  0x34   : > { %188 = sbr.rel (%p774_p10) target bundleno = 117 (0x75), region = 28 }
  0x39   : > { %641 = dma.done.wait (%p778_p11), [#allocation5], 4096  }
  0x3a   : > { %643 = vsyncadd (%p778_p11), [#allocation5], 4294963200 }
  0x3b   : > { %645 = dma.done.wait (%p778_p11), [#allocation8], 128  }
  0x3c   : > { %647 = vsyncadd (%p778_p11), [#allocation8], 4294967168  ;;  %s819_s26 = sand.u32 1, %s662_s19   ;;  %s399_s28 = sshll.u32 %s670_s21, 3 }
  0x3d   : > { %s397_s5 = sshll.u32 %s819_s26, 3  ;;  %s680_s9 = smov 0  }
  0x3e   : > { %s208_s7 = scalar_lea.vmem [#allocation9], %s397_s5  ;;  %s823_s8 = scalar_lea.vmem [#allocation10], %s397_s5 }
  0x3f LB: >> { %s225_s10 = sadd.s32 %s682_s9, %s399_s28  ;;  %s229_s12 = scalar_lea.vmem %s823_s8, %s682_s9 [#allocation10]  ;;  %s682_s9 = sphi %s680_s9, %s224_s9  }
  0x40   : >> { %s226_s11 = sld [smem:[#allocation3 + %s225_s10]]  ;;  %s224_s9 = sadd.s32 1, %s682_s9  }
  0x41   : >> { %p221_p4 = scmp.ge.s32.totalorder %s224_s9, 8  }
  0x42   : > { %v232_v2 = vld [vmem:[#allocation7] sm:$0xff] (%p221_p4)  ;;  %s402_s13 = sshll.u32 (%p221_p4), %s670_s21, 7  ;;  %s255_s17 = sshll.u32 (%p221_p4), %s208_s7, 4  ;;  %s833_s17 = int_to_ptr.vmem [resolvable:$true] %s255_s17 }
  0x43   : > { %s831_s16 = scalar_lea.hbm (%p221_p4), %s904_s3, %s402_s13  ;;  %s838_s28 = scalar_lea.hbm (%p221_p4), %s905_s4, %s402_s13 }
  0x44   : > { %223 = sbr.rel (!%p221_p4) target bundleno = 63 (0x3f), region = 96  ;;  %s269_s5 = sshll.u32 (%p221_p4), %s823_s8, 4  ;;  %s270_s5 = int_to_ptr.vmem [resolvable:$true] %s269_s5 }
  0x45   : > { %s236_s21 = scalar_lea.sflag (%p221_p4), [#allocation6], %s819_s26  ;;  %s558_s9 = scalar_lea.vmem (%p221_p4), %s833_s17, 128 }
  0x46   : >> { %s227_s6 = scalar_lea.vmem [#allocation4], %s226_s11  ;;  %p559_p8 = scmp.ne.s32.totalorder (%p221_p4), %s833_s17, %s558_s9 }
  0x47   : >> { %v228_v0 = vld [vmem:[%s227_s6] sm:$0x1]  ;;  %p912_p10 = scmp.ne.s32.totalorder (%p221_p4), %s907_s27, 0  ;;  %s689_s10 = smov (%p221_p4), [#allocation9]  }
  0x48   : >> { %230 = vst [vmem:[%s229_s12] sm:$0x1] %v228_v0  ;;  %s562_s11 = sshll.u32 (%p221_p4), %s689_s10, 4  ;;  %s563_s11 = int_to_ptr.vmem [resolvable:$false] %s562_s11 }
  0x49   : > { %p560_p11 = pnand %p559_p8, %p912_p10  ;;  %s564_s12 = scalar_lea.vmem %s563_s11, 256 }
  0x4a   : > { %p565_p0 = scmp.lt.s32.totalorder %s833_s17, %s563_s11  ;;  %p566_p6 = scmp.lt.s32.totalorder %s564_s12, %s558_s9 }
  0x4b   : > { %p561_p13 = pneg %p560_p11 }
  0x4c   : > { %p567_p7 = por %p566_p6, %p565_p0 }
  0x4e   : > { %p568_p9 = pnand %p567_p7, %p561_p13 }
  0x4f   : > { %v231_v1 = vld [vmem:[%s823_s8] sm:$0xff] }
  0x50   : > { %v233_v3 = vadd.f32 %v232_v2, %v231_v1 }
  0x52   : > { %234 = vst [vmem:[%s208_s7] sm:$0xff] %v233_v3 }
  0x53   : > { %571 = shalt.err (!%p568_p9)
}
  0x54   : > { %s572_s7 = scalar_lea.hbm %s831_s16, 128  ;;  %s576_s13 = scalar_lea.hbm %s904_s3, 256 }
  0x55   : > { %p573_p12 = scmp.ne.s32.totalorder %s831_s16, %s572_s7  ;;  %p577_p5 = scmp.lt.s32.totalorder %s831_s16, %s904_s3 }
  0x56   : > { %p578_p3 = scmp.lt.s32.totalorder %s576_s13, %s572_s7 }
  0x57   : > { %p574_p1 = pnand %p573_p12, %p912_p10 }
  0x58   : > { %p579_p4 = por %p578_p3, %p577_p5 }
  0x59   : > { %p575_p2 = pneg %p574_p1 }
  0x5b   : > { %p580_p8 = pnand %p579_p4, %p575_p2 }
  0x5d   : > { %583 = shalt.err (!%p580_p8)
}
  0x5e   : > { %414 = dma.vmem_to_hbm [thread:$0]  (%p912_p10), %s833_s17, 128, %s831_s16, %s236_s21  }
  0x5f   : > { %s241_s23 = scalar_lea.sflag [#allocation11], %s819_s26  ;;  %s584_s24 = scalar_lea.vmem %s270_s5, 128 }
  0x60   : > { %p585_p11 = scmp.ne.s32.totalorder %s270_s5, %s584_s24  ;;  %s690_s9 = smov [#allocation10]  }
  0x61   : > { %s588_s10 = sshll.u32 %s690_s9, 4  ;;  %s589_s10 = int_to_ptr.vmem [resolvable:$false] %s588_s10 }
  0x62   : > { %p586_p13 = pnand %p585_p11, %p912_p10  ;;  %s590_s11 = scalar_lea.vmem %s589_s10, 256 }
  0x63   : > { %p591_p6 = scmp.lt.s32.totalorder %s270_s5, %s589_s10  ;;  %p592_p7 = scmp.lt.s32.totalorder %s590_s11, %s584_s24 }
  0x64   : > { %p587_p0 = pneg %p586_p13 }
  0x65   : > { %p593_p9 = por %p592_p7, %p591_p6 }
  0x67   : > { %p594_p12 = pnand %p593_p9, %p587_p0 }
  0x69   : > { %597 = shalt.err (!%p594_p12)
}
  0x6a   : > { %s598_s16 = scalar_lea.hbm %s838_s28, 128  ;;  %s602_s21 = scalar_lea.hbm %s905_s4, 256 }
  0x6b   : > { %p599_p1 = scmp.ne.s32.totalorder %s838_s28, %s598_s16  ;;  %p603_p3 = scmp.lt.s32.totalorder %s838_s28, %s905_s4 }
  0x6c   : > { %p604_p4 = scmp.lt.s32.totalorder %s602_s21, %s598_s16 }
  0x6d   : > { %p600_p2 = pnand %p599_p1, %p912_p10 }
  0x6e   : > { %p605_p8 = por %p604_p4, %p603_p3 }
  0x6f   : > { %p601_p5 = pneg %p600_p2 }
  0x71   : > { %p606_p11 = pnand %p605_p8, %p601_p5 }
  0x73   : > { %609 = shalt.err (!%p606_p11)
}
  0x74   : > { %415 = dma.vmem_to_hbm [thread:$0]  (%p912_p10), %s270_s5, 128, %s838_s28, %s241_s23  }
  0x75 PF: > { %p436_p13 = scmp.ge.s32.totalorder %s678_s0, 2  ;;  %s281_s8 = sand.u32 1, %s658_s18  }
  0x76   : > { %p913_p0 = scmp.ne.s32.totalorder %s908_s29, 0  ;;  %s282_s6 = scalar_lea.sflag [#allocation6], %s281_s8 }
  0x78   : > { %p426_p6 = pnand %p436_p13, %p913_p0 }
  0x7a   : > { %p427_p7 = pneg %p426_p6 }
  0x7c   : > { %649 = dma.done.wait (%p427_p7), %s282_s6, 128  }
  0x7d   : > { %651 = vsyncadd (%p427_p7), %s282_s6, 4294967168  ;;  %s291_s13 = scalar_lea.sflag [#allocation11], %s281_s8 }
  0x7e   : > { %653 = dma.done.wait (%p427_p7), %s291_s13, 128  }
  0x7f   : > { %655 = vsyncadd (%p427_p7), %s291_s13, 4294967168  ;;  %s27_s0 = sadd.s32 1, %s678_s0   ;;  %s914_s18 = smov %s662_s19 }
  0x80   : > { %p24_p9 = scmp.ge.s32.totalorder %s27_s0, 4   ;;  %s915_s19 = smov %s666_s20 }
  0x81   : > { %s916_s20 = smov %s772_s30  ;;  %s917_s21 = smov %s674_s22 }
  0x82   : > { %s918_s22 = smov %s920_s25  ;;  %26 = sbr.rel (!%p24_p9) target bundleno = 13 (0xd), region = 107 }
  0x87   :  { %296 = vsyncpa [#allocation5], 1 }
  0x88   :  { %298 = vsyncpa [#allocation5 + $0x1], 1 }
  0x89   :  { %299 = vsyncpa [#allocation8], 1 }
  0x8a   :  { %300 = vsyncpa [#allocation6], 1 }
  0x8b   :  { %302 = vsyncpa [#allocation6 + $0x1], 1 }
  0x8c   :  { %303 = vsyncpa [#allocation11], 1 }
  0x8d   :  { %305 = vsyncpa [#allocation11 + $0x1], 1 }

</bundles_post_ra>
